<compile_context>
chip_gen: v7x
topology: tpu7x:2x2x1
jax: 0.10.0
libtpu: 0.0.40
codegen_flags: <defaults>
</compile_context>

<pallas_src>
import functools

import jax
import jax.numpy as jnp
from jax.experimental import pallas as pl
from jax.experimental.pallas import tpu as pltpu

_LANES = 128
_SUBLANES = 8


def _kl_partial_kernel(zm_ref, zv_ref, o_ref):
    # Elementwise KL integrand: EUP exp + VPU mul/add/sub, upcast to f32.
    zm = zm_ref[...].astype(jnp.float32)
    zv = zv_ref[...].astype(jnp.float32)
    vals = jnp.exp(zv) + zm * zm - 1.0 - zv
    # Compress (tm, 128) -> (8, 128) with across-vreg VPU adds only; the single
    # cross-lane/sublane reduction is deferred to the JAX wrapper.
    tm = zm_ref.shape[0]
    o_ref[...] = jnp.sum(vals.reshape(tm // _SUBLANES, _SUBLANES, _LANES), axis=0)


def _round_up(x, mult):
    return ((x + mult - 1) // mult) * mult


def kl_loss(z_mean, z_var, input_shape, *, tile_rows=1024):
    """Pallas implementation of KLLoss.forward.

    z_mean, z_var : (m, latent) arrays (float32 or bfloat16).
    input_shape   : static 5-tuple (m, c, H, W, D); only the shape matters.
    Returns a float32 scalar.
    """
    m, c, H, W, D = input_shape
    n = c * H * W * D
    inv_nm = 1.0 / (float(n) * float(m))

    assert z_var.shape == z_mean.shape
    assert z_mean.shape[0] == m, "batch dim of z_mean must match input batch dim"

    total = z_mean.size
    # Lane-dense layout: flatten to (rows, 128). Zero padding contributes
    # exp(0) + 0 - 1 - 0 == 0 to the sum, so no tail masking is needed.
    num_rows = pl.cdiv(total, _LANES)
    tm = _round_up(min(tile_rows, _round_up(num_rows, _SUBLANES)), _SUBLANES)
    rows_padded = _round_up(num_rows, tm)
    padded_total = rows_padded * _LANES

    def _prep(x):
        x = x.reshape(-1)
        x = jnp.pad(x, (0, padded_total - total))
        return x.reshape(rows_padded, _LANES)

    zm2 = _prep(z_mean)
    zv2 = _prep(z_var)

    num_tiles = rows_padded // tm
    itemsize = jnp.dtype(z_mean.dtype).itemsize

    partials = pl.pallas_call(
        _kl_partial_kernel,
        out_shape=jax.ShapeDtypeStruct((num_tiles * _SUBLANES, _LANES), jnp.float32),
        grid_spec=pltpu.PrefetchScalarGridSpec(
            num_scalar_prefetch=0,
            grid=(num_tiles,),
            in_specs=[
                pl.BlockSpec((tm, _LANES), lambda i: (i, 0)),
                pl.BlockSpec((tm, _LANES), lambda i: (i, 0)),
            ],
            out_specs=pl.BlockSpec((_SUBLANES, _LANES), lambda i: (i, 0)),
        ),
        compiler_params=pltpu.CompilerParams(
            dimension_semantics=("parallel",),
        ),
        cost_estimate=pl.CostEstimate(
            flops=5 * padded_total,
            transcendentals=padded_total,
            bytes_accessed=2 * padded_total * itemsize
            + num_tiles * _SUBLANES * _LANES * 4,
        ),
    )(zm2, zv2)

    # Tiny cross-tile reduction + 1/(n*m) scaling in plain JAX (negligible).
    return (jnp.sum(partials) * inv_nm).astype(jnp.float32)


if __name__ == "__main__":
    key = jax.random.PRNGKey(0)
    k1, k2, k3 = jax.random.split(key, 3)

    # Small shapes consistent with KLLoss.forward: input is 5-D (m,c,H,W,D),
    # z_mean / z_var are (m, latent).
    m, c, H, W, D = 2, 4, 8, 8, 8
    latent = 32

    z_mean = jax.random.normal(k1, (m, latent), dtype=jnp.float32)
    z_var = jax.random.normal(k2, (m, latent), dtype=jnp.float32)
    x = jax.random.normal(k3, (m, c, H, W, D), dtype=jnp.float32)  # shape-only

    loss = jax.block_until_ready(kl_loss(z_mean, z_var, x.shape))

    # Reference in plain JAX (mirrors the PyTorch math exactly).
    n = c * H * W * D
    ref = jnp.sum((1.0 / n) * jnp.sum(jnp.exp(z_var) + jnp.square(z_mean)
                                      - 1.0 - z_var, axis=-1)) / m
    assert jnp.allclose(loss, ref, rtol=1e-5, atol=1e-6), (loss, ref)

    print("KERNEL_OK")
</pallas_src>

<mosaic_0001>
module attributes {stable_mosaic.version = 11 : i64} {
  func.func @_kl_partial_kernel(%arg0: i32, %arg1: memref<8x128xf32, #tpu.memory_space<vmem>>, %arg2: memref<8x128xf32, #tpu.memory_space<vmem>>, %arg3: memref<8x128xf32, #tpu.memory_space<vmem>>) attributes {dimension_semantics = [#tpu.dimension_semantics<parallel>], iteration_bounds = array<i64: 1>, scalar_prefetch = 0 : i64, scratch_operands = 0 : i64, tpu.core_type = #tpu.core_type<tc>, window_params = [{transform_indices = @transform_0, window_bounds = array<i64: 8, 128>}, {transform_indices = @transform_1, window_bounds = array<i64: 8, 128>}, {transform_indices = @transform_2, window_bounds = array<i64: 8, 128>}]} {
    %c0 = arith.constant 0 : index
    %c0_0 = arith.constant 0 : index
    %0 = vector.load %arg1[%c0, %c0_0] : memref<8x128xf32, #tpu.memory_space<vmem>>, vector<8x128xf32>
    %c0_1 = arith.constant 0 : index
    %c0_2 = arith.constant 0 : index
    %1 = vector.load %arg2[%c0_1, %c0_2] : memref<8x128xf32, #tpu.memory_space<vmem>>, vector<8x128xf32>
    %2 = math.exp %1 : vector<8x128xf32>
    %3 = arith.mulf %0, %0 : vector<8x128xf32>
    %4 = arith.addf %2, %3 : vector<8x128xf32>
    %cst = arith.constant 1.000000e+00 : f32
    %5 = vector.broadcast %cst : f32 to vector<8x128xf32>
    %6 = arith.subf %4, %5 : vector<8x128xf32>
    %7 = arith.subf %6, %1 : vector<8x128xf32>
    %8 = vector.shape_cast %7 : vector<8x128xf32> to vector<1x8x128xf32>
    %cst_3 = arith.constant dense<0.000000e+00> : vector<8x128xf32>
    %9 = vector.multi_reduction <add>, %8, %cst_3 [0] : vector<1x8x128xf32> to vector<8x128xf32>
    %c0_4 = arith.constant 0 : index
    %c0_5 = arith.constant 0 : index
    %10 = vector.load %arg3[%c0_4, %c0_5] : memref<8x128xf32, #tpu.memory_space<vmem>>, vector<8x128xf32>
    tpu.vector_store %arg3[%c0_4, %c0_5], %9 {strides = array<i32>} : memref<8x128xf32, #tpu.memory_space<vmem>>, vector<8x128xf32>,
    return
  }
  func.func @transform_0(%arg0: i32) -> (i32, i32) {
    %c0_i32 = arith.constant 0 : i32
    %c0_i32_0 = arith.constant 0 : i32
    return %arg0, %c0_i32 : i32, i32
  }
  func.func @transform_1(%arg0: i32) -> (i32, i32) {
    %c0_i32 = arith.constant 0 : i32
    %c0_i32_0 = arith.constant 0 : i32
    return %arg0, %c0_i32 : i32, i32
  }
  func.func @transform_2(%arg0: i32) -> (i32, i32) {
    %c0_i32 = arith.constant 0 : i32
    %c0_i32_0 = arith.constant 0 : i32
    return %arg0, %c0_i32 : i32, i32
  }
}

</mosaic_0001>

<bundles_post_ra>
// kernel: tpu_custom_call.1
= control target key start
LH: loop header
LB: loop body
LE: loop exit
PB: predicated region body
PF: predicated region fallthrough
CT: control target
= control target key end

     0   :  { %7 = vsyncpa [#allocation3], 0  ;;  %s194_s0 = inlined_call_operand.hbm [shape: f32[8,128], index: 0, kind: input, shape index: {}]   ;;  %s195_s1 = inlined_call_operand.hbm [shape: f32[8,128], index: 1, kind: input, shape index: {}]   ;;  %s196_s2 = inlined_call_operand.hbm [shape: f32[8,128], index: 2, kind: output, shape index: {}]  }
   0x1   :  { %8 = vsyncpa [#allocation6], 0 }
   0x2   :  { %9 = vsyncpa [#allocation4], 0  ;;  %s140_s9 = smov [#allocation2]   ;;  %s141_s11 = smov [#allocation5]  }
   0x3   :  { %s16_s10 = sshll.u32 %s140_s9, 4  ;;  %s26_s12 = sshll.u32 %s141_s11, 4  ;;  %s17_s10 = int_to_ptr.vmem [resolvable:$true] %s16_s10  ;;  %s27_s12 = int_to_ptr.vmem [resolvable:$true] %s26_s12 }
   0x4   :  { %s68_s15 = scalar_lea.hbm %s194_s0, 128 }
   0x5   :  { %p69_p0 = scmp.ne.s32.totalorder %s194_s0, %s68_s15  ;;  %p72_p1 = scmp.lt.u32.totalorder %s68_s15, %s194_s0 }
   0x7   :  { %p74_p2 = pnand %p72_p1, %p69_p0 }
   0x9   :  { %77 = shalt.err (!%p74_p2)
}
   0xa   :  { %s78_s20 = scalar_lea.vmem %s17_s10, 128  ;;  %p83_p4 = scmp.lt.s32.totalorder %s17_s10, %s17_s10 }
   0xb   :  { %p79_p3 = scmp.ne.s32.totalorder %s17_s10, %s78_s20  ;;  %p84_p5 = scmp.lt.s32.totalorder %s78_s20, %s78_s20 }
   0xd   :  { %p85_p6 = por %p84_p5, %p83_p4 }
   0xf   :  { %p86_p7 = pnand %p85_p6, %p79_p3 }
  0x11   :  { %89 = shalt.err (!%p86_p7)
}
  0x12   :  { %19 = dma.hbm_to_vmem [thread:$0]  %s194_s0, 128, %s17_s10, [#allocation3]  }
  0x13   :  { %s90_s25 = scalar_lea.hbm %s195_s1, 128 }
  0x14   :  { %p91_p8 = scmp.ne.s32.totalorder %s195_s1, %s90_s25  ;;  %p94_p9 = scmp.lt.u32.totalorder %s90_s25, %s195_s1 }
  0x16   :  { %p96_p10 = pnand %p94_p9, %p91_p8 }
  0x18   :  { %99 = shalt.err (!%p96_p10)
}
  0x19   :  { %s100_s30 = scalar_lea.vmem %s27_s12, 128  ;;  %p105_p12 = scmp.lt.s32.totalorder %s27_s12, %s27_s12 }
  0x1a   :  { %p101_p11 = scmp.ne.s32.totalorder %s27_s12, %s100_s30  ;;  %p106_p13 = scmp.lt.s32.totalorder %s100_s30, %s100_s30 }
  0x1c   :  { %p107_p0 = por %p106_p13, %p105_p12 }
  0x1e   :  { %p108_p1 = pnand %p107_p0, %p101_p11 }
  0x20   :  { %111 = shalt.err (!%p108_p1)
}
  0x21   :  { %29 = dma.hbm_to_vmem [thread:$0]  %s195_s1, 128, %s27_s12, [#allocation6]  }
  0x22   :  { %134 = dma.done.wait [#allocation3], 128  }
  0x23   :  { %135 = vsyncadd [#allocation3], 4294967168 }
  0x24   :  { %136 = dma.done.wait [#allocation6], 128  }
  0x25   :  { %137 = vsyncadd [#allocation6], 4294967168  ;;  %v37_v0 = vld [vmem:[#allocation5] sm:$0xff]  ;;  %v36_v2 = vld [vmem:[#allocation2] sm:$0xff]  ;;  %s142_s4 = smov [#allocation7]  }
  0x26   :  { %v38_v1 = vmul.f32 1.442695, %v37_v0  ;;  %v40_v3 = vmul.f32 %v36_v2, %v36_v2  ;;  %s52_s5 = sshll.u32 %s142_s4, 4  ;;  %s53_s5 = int_to_ptr.vmem [resolvable:$true] %s52_s5 }
  0x27   :  { %s112_s6 = scalar_lea.vmem %s53_s5, 128  ;;  %p117_p3 = scmp.lt.s32.totalorder %s53_s5, %s53_s5 }
  0x28   :  { %66 = vpow2.f32 %v38_v1  ;;  %p113_p2 = scmp.ne.s32.totalorder %s53_s5, %s112_s6  ;;  %p118_p4 = scmp.lt.s32.totalorder %s112_s6, %s112_s6 }
  0x2a   :  { %p119_p5 = por %p118_p4, %p117_p3 }
  0x2c   :  { %p120_p6 = pnand %p119_p5, %p113_p2 }
  0x32   :  { %v67_v4 = vpop.eup %66 }
  0x33   :  { %v41_v5 = vadd.f32 %v67_v4, %v40_v3 }
  0x35   :  { %v62_v6 = vadd.f32 -1.0, %v41_v5 }
  0x37   :  { %v43_v7 = vsub.f32 %v62_v6, %v37_v0 }
  0x39   :  { %45 = vst [vmem:[#allocation7] sm:$0xff] %v43_v7 }
  0x3a   :  { %123 = shalt.err (!%p120_p6)
}
  0x3b   :  { %s124_s8 = scalar_lea.hbm %s196_s2, 128 }
  0x3c   :  { %p125_p7 = scmp.ne.s32.totalorder %s196_s2, %s124_s8  ;;  %p128_p8 = scmp.lt.u32.totalorder %s124_s8, %s196_s2 }
  0x3e   :  { %p130_p9 = pnand %p128_p8, %p125_p7 }
  0x40   :  { %133 = shalt.err (!%p130_p9)
}
  0x41   :  { %55 = dma.vmem_to_hbm [thread:$0]  %s53_s5, 128, %s196_s2, [#allocation4]  }
  0x42   :  { %138 = dma.done.wait [#allocation4], 128  }
  0x43   :  { %139 = vsyncadd [#allocation4], 4294967168 }
  0x44   :  { %59 = vsyncpa [#allocation3], 1 }
  0x45   :  { %60 = vsyncpa [#allocation6], 1 }
  0x46   :  { %61 = vsyncpa [#allocation4], 1 }

</bundles_post_ra>
